<compile_context>
chip_gen: v6e
topology: v6e:2x2x1
jax: 0.10.0
libtpu: 0.0.40
codegen_flags: <defaults>
</compile_context>

<pallas_src>
import numpy as np
import jax
import jax.numpy as jnp
from jax.experimental import pallas as pl
from jax.experimental.pallas import tpu as pltpu


# --------------------------------- helpers --------------------------------- #

def _interp_matrix(n_in, n_out):
    """align_corners=True bilinear interpolation matrix, shape (n_out, n_in)."""
    if n_in == 1:
        return np.ones((n_out, 1), np.float32)
    src = np.arange(n_out) * (n_in - 1) / (n_out - 1)
    lo = np.minimum(np.floor(src).astype(np.int64), n_in - 2)
    w_hi = (src - lo).astype(np.float32)
    A = np.zeros((n_out, n_in), np.float32)
    A[np.arange(n_out), lo] = 1.0 - w_hi
    A[np.arange(n_out), lo + 1] += w_hi
    return A


def _row_block(total, target):
    """Divisor of `total` that is a multiple of 8 and <= target.  Leaves at
    least two grid steps when `total` is large enough (v7x has 2 TensorCores).
    Falls back to the full extent (always a legal block shape)."""
    cap = max(1, min(target, total // 2 if total >= 16 else total))
    for d in range(cap, 0, -1):
        if total % d == 0 and d % 8 == 0:
            return d
    # TODO(synk): cap this fallback (pad the row count) for huge prime-ish extents.
    return total


def _conv_row_tile(h, w, target_pixels=1024):
    """Row-tile height for the conv: largest divisor of `h` whose tile covers
    <= target_pixels output pixels with a sublane-friendly (TH*W) extent."""
    divs = [d for d in range(1, h + 1) if h % d == 0]
    ok = [d for d in divs if (d * w) % 8 == 0 or d == h]
    fit = [d for d in ok if d * w <= target_pixels]
    return max(fit) if fit else min(ok)


# ------------------------- separable bilinear upsample --------------------- #

def _up_w_kernel(awt_ref, x_ref, o_ref):
    # awt: (W, Wo) f32, x: (BR, W) f32, o: (BR, Wo) bf16.
    # Plain 2-D matmul: no broadcast weight, no batched einsum.
    o_ref[...] = jnp.dot(x_ref[...], awt_ref[...],
                         preferred_element_type=jnp.float32).astype(o_ref.dtype)


def _up_h_kernel(ah_ref, x_ref, o_ref):
    # ah: (Ho, H) f32, x: (1, H, Wo*C) bf16, o: (1, Ho, Wo*C) bf16.
    o_ref[0] = jnp.dot(ah_ref[...], x_ref[0].astype(jnp.float32),
                       preferred_element_type=jnp.float32).astype(o_ref.dtype)


def bilinear_upsample_x2(x1_nchw):
    """(N, C, H, W) f32 NCHW -> (N, 2H, 2W, C) NHWC bf16, bilinear,
    align_corners=True.  Both passes are plain 2-D matmuls."""
    N, C, H, W = x1_nchw.shape
    Ho, Wo = 2 * H, 2 * W
    awt = jnp.asarray(_interp_matrix(W, Wo).T)            # (W, Wo) f32
    ah = jnp.asarray(_interp_matrix(H, Ho))               # (Ho, H) f32

    # --- W pass: (N*C*H, W) @ (W, Wo) on the native NCHW layout, row-tiled.
    rows = N * C * H
    br = _row_block(rows, 512)
    t = pl.pallas_call(
        _up_w_kernel,
        out_shape=jax.ShapeDtypeStruct((rows, Wo), jnp.bfloat16),
        grid=(rows // br,),
        in_specs=[pl.BlockSpec((W, Wo), lambda i: (0, 0)),
                  pl.BlockSpec((br, W), lambda i: (i, 0))],
        out_specs=pl.BlockSpec((br, Wo), lambda i: (i, 0)),
        compiler_params=pltpu.CompilerParams(dimension_semantics=("parallel",)),
    )(awt, x1_nchw.reshape(rows, W))

    # Single small wrapper transpose (replaces the NCHW->NHWC conversion of x1
    # we would pay anyway): (N, C, H, Wo) -> (N, H, Wo, C) -> (N, H, Wo*C).
    t = jnp.transpose(t.reshape(N, C, H, Wo), (0, 2, 3, 1)).reshape(N, H, Wo * C)

    # --- H pass: per-sample (Ho, H) @ (H, Wo*C) -> NHWC bf16 output directly.
    out = pl.pallas_call(
        _up_h_kernel,
        out_shape=jax.ShapeDtypeStruct((N, Ho, Wo * C), jnp.bfloat16),
        grid=(N,),
        in_specs=[pl.BlockSpec((Ho, H), lambda n: (0, 0)),
                  pl.BlockSpec((1, H, Wo * C), lambda n: (n, 0, 0))],
        out_specs=pl.BlockSpec((1, Ho, Wo * C), lambda n: (n, 0, 0)),
        compiler_params=pltpu.CompilerParams(dimension_semantics=("parallel",)),
    )(ah, t)
    return out.reshape(N, Ho, Wo, C)


# ---------------- conv3x3 (no bias) + per-channel batch stats --------------- #

def conv3x3_bn_stats(x_nhwc_bf16, w_oihw):
    """3x3 conv, padding=1 (folded into VMEM), NO bias (cancelled by BN).

    x : (N, H, W, Cin) bfloat16  -- unpadded
    w : (Cout, Cin, 3, 3) float32
    Returns:
      y     : (N, H*W, Cout) bfloat16  conv output (channel-minor)
      stats : (2, Cout) float32        per-channel [sum, sum^2] over (N, H, W)
    """
    N, H, W, Cin = x_nhwc_bf16.shape
    Cout = w_oihw.shape[0]
    # torch (Cout, Cin, kH, kW) -> (kH, kW, Cin, Cout) -> (9*Cin, Cout), bf16.
    wmat = jnp.transpose(w_oihw, (2, 3, 1, 0)).reshape(9 * Cin, Cout)
    wmat = wmat.astype(jnp.bfloat16)

    TH = _conv_row_tile(H, W)         # ~1K output pixels per grid step
    nt = H // TH

    def kernel(x_ref, w_ref, y_ref, st_ref, xpad_ref):
        t = pl.program_id(1)

        @pl.when(t == 0)
        def _():
            # Fold the conv's zero padding into VMEM: zero the padded scratch
            # once per sample and copy the sample interior (no jnp.pad in HBM).
            xpad_ref[...] = jnp.zeros_like(xpad_ref)
            xpad_ref[pl.ds(1, H), pl.ds(1, W), :] = x_ref[0]
            st_ref[...] = jnp.zeros_like(st_ref)

        row0 = t * TH
        # In-VMEM im2col: 9 shifted views -> (TH*W, 9*Cin), ONE MXU matmul
        # (K = 9*Cin) with f32 accumulation.
        taps = [xpad_ref[pl.ds(row0 + dy, TH), pl.ds(dx, W), :]
                for dy in range(3) for dx in range(3)]
        cols = jnp.concatenate(taps, axis=-1).reshape(TH * W, 9 * Cin)
        acc = jnp.dot(cols, w_ref[...], preferred_element_type=jnp.float32)

        # bf16 HBM write of the conv output (stats use the f32 accumulator).
        # TODO(synk): for tiny Cout (< 128) this store is lane-masked; a
        # sublane->lane repack to (TH, W*Cout) would make it fully dense.
        y_ref[0] = acc.astype(y_ref.dtype)

        # Per-channel [sum, sum^2], accumulated across row tiles in VMEM (the
        # stats block index is constant over t -> single write-back per sample).
        s0 = jnp.sum(acc, axis=0, keepdims=True)
        s1 = jnp.sum(acc * acc, axis=0, keepdims=True)
        st_ref[0] += jnp.concatenate([s0, s1], axis=0)

    # TODO(synk): for very large samples the whole sample stays VMEM-resident;
    # a halo-tiled manual DMA (and an explicit vmem_limit_bytes budget on v7x's
    # 64 MiB VMEM) would bound that.
    y, stats = pl.pallas_call(
        kernel,
        out_shape=(jax.ShapeDtypeStruct((N, H * W, Cout), jnp.bfloat16),
                   jax.ShapeDtypeStruct((N, 2, Cout), jnp.float32)),
        grid=(N, nt),
        in_specs=[pl.BlockSpec((1, H, W, Cin), lambda n, t: (n, 0, 0, 0)),
                  pl.BlockSpec((9 * Cin, Cout), lambda n, t: (0, 0))],
        out_specs=(pl.BlockSpec((1, TH * W, Cout), lambda n, t: (n, t, 0)),
                   pl.BlockSpec((1, 2, Cout), lambda n, t: (n, 0, 0))),
        scratch_shapes=[pltpu.VMEM((H + 2, W + 2, Cin), jnp.bfloat16)],
        compiler_params=pltpu.CompilerParams(
            dimension_semantics=("parallel", "arbitrary")),
    )(x_nhwc_bf16, wmat)
    # Tiny cross-sample reduction of the per-sample partials.
    return y, jnp.sum(stats, axis=0)


# --------------------------- BN normalize + ReLU ---------------------------- #

def _bn_relu_flat_kernel(x_ref, sc_ref, sh_ref, o_ref):
    # x: (TR, 128), sc/sh: (1, 128) f32, o: (TR, 128) -- lane-dense load/store.
    x = x_ref[...].astype(jnp.float32)
    o_ref[...] = jnp.maximum(x * sc_ref[...] + sh_ref[...], 0.0).astype(o_ref.dtype)


def _bn_relu_cmin_kernel(x_ref, sc_ref, sh_ref, o_ref):
    # x: (1, HW, C), sc/sh: (1, C), o: (1, HW, C).
    x = x_ref[0].astype(jnp.float32)
    o_ref[0] = jnp.maximum(x * sc_ref[...] + sh_ref[...], 0.0).astype(o_ref.dtype)


def bn_relu(y, scale, shift, out_dtype):
    """y: (N, HW, C) bf16; per-channel affine (scale/shift) + ReLU."""
    N, HW, C = y.shape
    total = N * HW * C
    if C <= 128 and 128 % C == 0 and total % 128 == 0:
        # Lane-dense path: channel of lane l is (l % C) under row-major flatten.
        rep = 128 // C
        sc = jnp.tile(scale.astype(jnp.float32), rep).reshape(1, 128)
        sh = jnp.tile(shift.astype(jnp.float32), rep).reshape(1, 128)
        T = total // 128
        TR = _row_block(T, 1024)
        z = pl.pallas_call(
            _bn_relu_flat_kernel,
            out_shape=jax.ShapeDtypeStruct((T, 128), out_dtype),
            grid=(T // TR,),
            in_specs=[pl.BlockSpec((TR, 128), lambda i: (i, 0)),
                      pl.BlockSpec((1, 128), lambda i: (0, 0)),
                      pl.BlockSpec((1, 128), lambda i: (0, 0))],
            out_specs=pl.BlockSpec((TR, 128), lambda i: (i, 0)),
            compiler_params=pltpu.CompilerParams(
                dimension_semantics=("parallel",)),
        )(y.reshape(T, 128), sc, sh)
        return z.reshape(N, HW, C)
    # Fallback: per-sample channel-minor blocks.
    sc = scale.astype(jnp.float32).reshape(1, C)
    sh = shift.astype(jnp.float32).reshape(1, C)
    return pl.pallas_call(
        _bn_relu_cmin_kernel,
        out_shape=jax.ShapeDtypeStruct((N, HW, C), out_dtype),
        grid=(N,),
        in_specs=[pl.BlockSpec((1, HW, C), lambda n: (n, 0, 0)),
                  pl.BlockSpec((1, C), lambda n: (0, 0)),
                  pl.BlockSpec((1, C), lambda n: (0, 0))],
        out_specs=pl.BlockSpec((1, HW, C), lambda n: (n, 0, 0)),
        compiler_params=pltpu.CompilerParams(dimension_semantics=("parallel",)),
    )(y, sc, sh)


# -------------------------------- Up forward -------------------------------- #

def up_forward(x1, x2, params, eps=1e-5):
    """x1: (N, C1, H1, W1), x2: (N, C2, H2, W2) f32 NCHW -> NCHW f32."""
    N = x1.shape[0]

    # 1) bilinear x2 upsample of x1 -> NHWC bf16 (separable Pallas matmuls).
    x1_up = bilinear_upsample_x2(x1)                       # (N, 2H1, 2W1, C1)

    # 2) pad to x2's spatial size (F.pad semantics); no-op when shapes match.
    x2_nhwc = jnp.transpose(x2, (0, 2, 3, 1)).astype(jnp.bfloat16)
    diffY = x2_nhwc.shape[1] - x1_up.shape[1]
    diffX = x2_nhwc.shape[2] - x1_up.shape[2]
    if diffY or diffX:
        x1_up = jnp.pad(x1_up, ((0, 0),
                                (diffY // 2, diffY - diffY // 2),
                                (diffX // 2, diffX - diffX // 2),
                                (0, 0)))

    # 3) channel concat (torch.cat([x2, x1], dim=1)) -- once, in bf16.
    # TODO(synk): fold this concat into the first conv (two input refs, split
    # weight rows per tap) to remove the remaining HBM round trip.
    x = jnp.concatenate([x2_nhwc, x1_up], axis=-1)         # (N, H, W, Cin) bf16
    Hh, Ww = x.shape[1], x.shape[2]

    # 4) [conv3x3 -> BatchNorm (training-mode batch stats) -> ReLU] per layer.
    n_layers = len(params)
    out = None
    for li, (w, b, gamma, beta) in enumerate(params):
        del b   # conv bias is exactly cancelled by BN mean subtraction
        y, stats = conv3x3_bn_stats(x, w)                  # y: (N, H*W, Cout) bf16
        cnt = float(N * Hh * Ww)
        mean = stats[0] / cnt
        var = jnp.maximum(stats[1] / cnt - mean * mean, 0.0)  # clamp E[x^2]-E[x]^2
        inv_std = jax.lax.rsqrt(var + eps)
        scale = gamma * inv_std
        shift = beta - mean * scale
        last = (li == n_layers - 1)
        z = bn_relu(y, scale, shift, jnp.float32 if last else jnp.bfloat16)
        if last:
            out = z.reshape(N, Hh, Ww, -1)
        else:
            x = z.reshape(N, Hh, Ww, -1)                   # metadata-only reshape
    return jnp.transpose(out, (0, 3, 1, 2))                # back to NCHW


# ----------------------------- pure-JAX reference --------------------------- #

def up_forward_ref(x1, x2, params):
    N, C1, H1, W1 = x1.shape
    Ho, Wo = 2 * H1, 2 * W1
    Ah = jnp.asarray(_interp_matrix(H1, Ho))
    Aw = jnp.asarray(_interp_matrix(W1, Wo))
    x1_up = jnp.einsum('oh,nchw,pw->ncop', Ah, x1, Aw)
    diffY = x2.shape[2] - x1_up.shape[2]
    diffX = x2.shape[3] - x1_up.shape[3]
    x1_up = jnp.pad(x1_up, ((0, 0), (0, 0),
                            (diffY // 2, diffY - diffY // 2),
                            (diffX // 2, diffX - diffX // 2)))
    x = jnp.concatenate([x2, x1_up], axis=1)
    for (w, b, gamma, beta) in params:
        y = jax.lax.conv_general_dilated(
            x, w, window_strides=(1, 1), padding=((1, 1), (1, 1)),
            dimension_numbers=('NCHW', 'OIHW', 'NCHW'))
        y = y + b[None, :, None, None]
        mean = jnp.mean(y, axis=(0, 2, 3), keepdims=True)
        var = jnp.var(y, axis=(0, 2, 3), keepdims=True)
        y = (y - mean) / jnp.sqrt(var + 1e-5)
        y = y * gamma[None, :, None, None] + beta[None, :, None, None]
        x = jnp.maximum(y, 0.0)
    return x


# ------------------------------------ main ---------------------------------- #

if __name__ == "__main__":
    key = jax.random.PRNGKey(0)

    # Up(in_ch=8, out_ch=8, layers=2, bilinear=True)
    in_ch, out_ch, layers = 8, 8, 2
    N = 2
    C1 = in_ch // 2            # channels of the low-res feature x1
    C2 = in_ch - C1            # channels of the skip feature x2
    H1, W1 = 8, 8              # x1 spatial
    H2, W2 = 16, 16            # x2 spatial (= 2 * x1 spatial)

    key, kx1, kx2 = jax.random.split(key, 3)
    x1 = jax.random.normal(kx1, (N, C1, H1, W1), jnp.float32)
    x2 = jax.random.normal(kx2, (N, C2, H2, W2), jnp.float32)

    # Deterministic synthetic parameters (conv weight/bias + BN gamma/beta).
    params = []
    cin = in_ch
    for _ in range(layers):
        key, kw, kb = jax.random.split(key, 3)
        fan_in = cin * 9
        w = jax.random.normal(kw, (out_ch, cin, 3, 3), jnp.float32) / jnp.sqrt(fan_in)
        b = 0.01 * jax.random.normal(kb, (out_ch,), jnp.float32)
        gamma = jnp.ones((out_ch,), jnp.float32)
        beta = jnp.zeros((out_ch,), jnp.float32)
        params.append((w, b, gamma, beta))
        cin = out_ch

    out = jax.block_until_ready(up_forward(x1, x2, params))

    assert out.shape == (N, out_ch, H2, W2), out.shape
    assert bool(jnp.all(jnp.isfinite(out)))

    ref = jax.block_until_ready(up_forward_ref(x1, x2, params))
    # Loose tolerance: bf16 activations/weights end-to-end (f32 accumulation)
    # vs a pure f32 XLA reference.
    assert bool(jnp.allclose(out, ref, atol=1e-1, rtol=1e-1)), \
        float(jnp.max(jnp.abs(out - ref)))

    print("KERNEL_OK")
</pallas_src>

<mosaic_0001>
module attributes {stable_mosaic.version = 11 : i64} {
  func.func @_up_w_kernel(%arg0: i32, %arg1: memref<8x16xf32, #tpu.memory_space<vmem>>, %arg2: memref<32x8xf32, #tpu.memory_space<vmem>>, %arg3: memref<32x16xbf16, #tpu.memory_space<vmem>>) attributes {dimension_semantics = [#tpu.dimension_semantics<parallel>], iteration_bounds = array<i64: 2>, scalar_prefetch = 0 : i64, scratch_operands = 0 : i64, tpu.core_type = #tpu.core_type<tc>, window_params = [{pipeline_mode = #tpu.pipeline_mode<synchronous>, transform_indices = @transform_0, window_bounds = array<i64: 8, 16>}, {transform_indices = @transform_1, window_bounds = array<i64: 32, 8>}, {transform_indices = @transform_2, window_bounds = array<i64: 32, 16>}]} {
    %c0 = arith.constant 0 : index
    %c0_0 = arith.constant 0 : index
    %0 = vector.load %arg2[%c0, %c0_0] : memref<32x8xf32, #tpu.memory_space<vmem>>, vector<32x8xf32>
    %c0_1 = arith.constant 0 : index
    %c0_2 = arith.constant 0 : index
    %1 = vector.load %arg1[%c0_1, %c0_2] : memref<8x16xf32, #tpu.memory_space<vmem>>, vector<8x16xf32>
    %cst = arith.constant dense<0.000000e+00> : vector<32x16xf32>
    %2 = tpu.matmul %0, %1, %cst {dimension_numbers = #tpu.dot_dimension_numbers<[1], [0], [0], [1], [0, 0, 1, 1], [], []>} : vector<32x8xf32>, vector<8x16xf32>, vector<32x16xf32> -> vector<32x16xf32>
    %3 = arith.truncf %2 : vector<32x16xf32> to vector<32x16xbf16>
    %c0_3 = arith.constant 0 : index
    %c0_4 = arith.constant 0 : index
    %4 = vector.load %arg3[%c0_3, %c0_4] : memref<32x16xbf16, #tpu.memory_space<vmem>>, vector<32x16xbf16>
    tpu.vector_store %arg3[%c0_3, %c0_4], %3 {strides = array<i32>} : memref<32x16xbf16, #tpu.memory_space<vmem>>, vector<32x16xbf16>,
    return
  }
  func.func @transform_0(%arg0: i32) -> (i32, i32) {
    %c0_i32 = arith.constant 0 : i32
    %c0_i32_0 = arith.constant 0 : i32
    %c0_i32_1 = arith.constant 0 : i32
    return %c0_i32, %c0_i32_0 : i32, i32
  }
  func.func @transform_1(%arg0: i32) -> (i32, i32) {
    %c0_i32 = arith.constant 0 : i32
    %c0_i32_0 = arith.constant 0 : i32
    return %arg0, %c0_i32 : i32, i32
  }
  func.func @transform_2(%arg0: i32) -> (i32, i32) {
    %c0_i32 = arith.constant 0 : i32
    %c0_i32_0 = arith.constant 0 : i32
    return %arg0, %c0_i32 : i32, i32
  }
}

</mosaic_0001>

<bundles_post_ra>
// kernel: tpu_custom_call.1
= control target key start
LH: loop header
LB: loop body
LE: loop exit
PB: predicated region body
PF: predicated region fallthrough
CT: control target
= control target key end

     0   :  { %s396_s9 = smov 0   ;;  %s416_s0 = inlined_call_operand.vmem [shape: f32[8,16], index: 0, kind: input, shape index: {}]   ;;  %s417_s1 = inlined_call_operand.vmem [shape: f32[64,8], index: 1, kind: input, shape index: {}]   ;;  %s418_s2 = inlined_call_operand.vmem [shape: bf16[64,16], index: 2, kind: output, shape index: {}]  }
   0x1 LB: > { %s327_s10 = sadd.s32 4294967295, %s379_s9   ;;  %p331_p0 = scmp.ge.s32.totalorder %s379_s9, 1  ;;  %s379_s9 = sphi %s396_s9, %s12_s9  }
   0x2   : > { %p113_p1 = scmp.lt.s32.totalorder %s379_s9, 3 }
   0x4   : > { %p114_p2 = pnand %p331_p0, %p113_p1 }
   0x5   : > { %s332_s13 = sshll.u32 (!%p114_p2), %s327_s10, 2 }
   0x6   : > { %117 = sbr.rel (%p114_p2) target bundleno = 214 (0xd6), region = 28  ;;  %p136_p3 = scmp.lt.s32.totalorder (!%p114_p2), %s332_s13, 7 }
   0xb   : > { %v151_v0 = vld [vmem:[%s416_s0] sm:$0xff]  ;;  %s420_s13 = smov (!%p136_p3, %s332_s13), 7  ;;  %vm152_vm0 = vcmask 64512   ;;  %vm266_vm1 = vcmask 125952  }
   0xc   : > { %355 = vmatprep.subr.mxu0 %v151_v0  ;;  %363 = vmatprep.subr.mxu1 %v151_v0  ;;  %s333_s14 = sshll.u32 %s420_s13, 3  ;;  %s335_s18 = sshll.u32 %s420_s13, 2 }
   0xd   : > { %356 = vmatpush3.msra.mxu0 %v151_v0  ;;  %364 = vmatpush3.msra.mxu1 %v151_v0  ;;  %s139_s17 = scalar_lea.vmem %s417_s1, %s333_s14  ;;  %s145_s21 = scalar_lea.vmem %s418_s2, %s335_s18 }
   0xe   : > { %v147_v1 = vld [vmem:[%s139_s17] sm:$0xff]  ;;  %v149_v2 = vld [vmem:[%s139_s17 + $0x10] sm:$0xff]  ;;  %v148_v3 = vld [vmem:[%s139_s17 + $0x8] sm:$0xff] }
   0xf   : > { %357 = vmatprep.mubr.msk.f32.mxu0 %vm152_vm0, %v147_v1  ;;  %360 = vmatprep.mubr.msk.f32.mxu1 %vm152_vm0, %v149_v2  ;;  %v150_v4 = vld [vmem:[%s139_s17 + $0x18] sm:$0xff] }
  0x10   : > { %358 = vmatmul.mubr.msk.f32.vlgmr.msra.gmra.mxu0 %vm152_vm0, %v148_v3  ;;  %361 = vmatmul.mubr.msk.f32.vlgmr.msra.gmra.mxu1 %vm152_vm0, %v150_v4 }
  0xd0   : > { %v359_v5 = vpop.f32.mrf.mxu0  ;;  %v362_v6 = vpop.f32.mrf.mxu1 }
  0xd1   : > { %v347_v10 = vpack.c.bf16 %v359_v5, %v359_v5  ;;  %v349_v12 = vpack.c.bf16 %v362_v6, %v362_v6 }
  0xd2   : > { %v231_v7 = vpop.f32.mrf.mxu0  ;;  %v241_v8 = vpop.f32.mrf.mxu1 }
  0xd3   : > { %v346_v9 = vpack.c.bf16 %v231_v7, %v231_v7  ;;  %v348_v11 = vpack.c.bf16 %v241_v8, %v241_v8  ;;  %268 = vst.msk [vmem:[%s145_s21 + $0x4] sm:$0xf] %vm266_vm1, %v347_v10  ;;  %270 = vst.msk [vmem:[%s145_s21 + $0xc] sm:$0xf] %vm266_vm1, %v349_v12 }
  0xd5   : > { %267 = vst.msk [vmem:[%s145_s21] sm:$0xf] %vm266_vm1, %v346_v9  ;;  %269 = vst.msk [vmem:[%s145_s21 + $0x8] sm:$0xf] %vm266_vm1, %v348_v11 }
  0xd6 PF: > { %s12_s9 = sadd.s32 1, %s379_s9  }
  0xd7   : > { %p9_p4 = scmp.ge.s32.totalorder %s12_s9, 4  }
  0xd9   :  { %11 = sbr.rel (!%p9_p4) target bundleno = 1 (0x1), region = 58 }

</bundles_post_ra>
